<compile_context>
chip_gen: v5e
topology: v5e:2x2
jax: 0.10.0
libtpu: 0.0.40
codegen_flags: <defaults>
</compile_context>

<pallas_src>
import functools

import jax
import jax.numpy as jnp
from jax.experimental import pallas as pl
from jax.experimental.pallas import tpu as pltpu


def _round_up(v: int, m: int) -> int:
    return ((v + m - 1) // m) * m


def _cdiv(a: int, b: int) -> int:
    return (a + b - 1) // b


def _pick_tile(dim: int, t_max: int, align: int, min_tiles: int = 1) -> int:
    """Balanced tile size: split `dim` into roughly-equal aligned tiles.

    Avoids the "257 pads to 512" failure mode: we first decide how many tiles
    are needed (at most t_max each, at least min_tiles if the dim is large
    enough), then size the tile to cover the dim with minimal padding.
    """
    dim_a = _round_up(dim, align)
    n_tiles = max(min_tiles, _cdiv(dim_a, t_max))
    n_tiles = min(n_tiles, dim_a // align)       # can't split below one align unit
    return _round_up(_cdiv(dim_a, n_tiles), align)


# ----------------------------------------------------------------------------
# Kernel body: grid = (M tiles, N tiles, K tiles); K is the reduction axis.
# ----------------------------------------------------------------------------
def _linear_sigmoid_kernel(x_ref, wT_ref, b_ref, o_ref, acc_ref):
    k = pl.program_id(2)

    # MXU matmul, f32 accumulation. wT is already (K, N): no in-kernel transpose.
    partial = jnp.dot(x_ref[...], wT_ref[...], preferred_element_type=jnp.float32)

    @pl.when(k == 0)
    def _init():
        # Bias folded directly into the first partial product: no separate
        # broadcast-init + accumulate (saves one acc read+write per tile).
        acc_ref[...] = b_ref[...].astype(jnp.float32) + partial

    @pl.when(k != 0)
    def _accum():
        acc_ref[...] += partial

    @pl.when(k == pl.num_programs(2) - 1)
    def _finalize():
        y = acc_ref[...]
        # sigmoid(y) == 0.5 * (1 + tanh(0.5 * y)): single EUP op epilogue.
        o_ref[...] = (0.5 * (1.0 + jnp.tanh(0.5 * y))).astype(o_ref.dtype)


# ----------------------------------------------------------------------------
# One-time weight preparation ("model load" time, NOT per forward call).
# ----------------------------------------------------------------------------
def prepare_linear(w, b, *, tn_max=512, tk_max=512, compute_dtype=jnp.bfloat16):
    """Transpose/pad/cast the Linear parameters once.

    w: (N, K) PyTorch Linear layout, b: (N,).
    Returns a dict consumed by `add_sigmoid`.
    """
    N, K = w.shape
    # Lane dims aligned to 128; N split into >=2 tiles when large enough so the
    # parallel grid has >=2 programs (keeps both v7x TensorCores busy even when
    # the batch fits in one M tile).
    tn = _pick_tile(N, tn_max, 128, min_tiles=2)
    tk = _pick_tile(K, tk_max, 128)
    Np, Kp = _round_up(N, tn), _round_up(K, tk)

    wT = jnp.asarray(w).T                                   # (K, N), once
    if (Kp, Np) != (K, N):
        wT = jnp.pad(wT, ((0, Kp - K), (0, Np - N)))        # once
    wT = wT.astype(compute_dtype)                           # once

    b2d = jnp.asarray(b).reshape(1, N).astype(jnp.float32)
    if Np != N:
        b2d = jnp.pad(b2d, ((0, 0), (0, Np - N)))

    return {"wT": wT, "b2d": b2d, "N": N, "K": K, "tn": tn, "tk": tk}


# ----------------------------------------------------------------------------
# Per-call forward: sigmoid(x @ w.T + b)
# ----------------------------------------------------------------------------
@functools.partial(jax.jit, static_argnames=("tm_max", "tn", "tk", "n_valid"))
def _add_sigmoid_impl(x, wT, b2d, *, tm_max, tn, tk, n_valid):
    out_dtype = x.dtype
    B, K = x.shape
    Kp, Np = wT.shape

    tm = _pick_tile(B, tm_max, 8)
    Bp = _round_up(B, tm)

    # Only x is touched per call: cast to the matmul dtype and zero-pad M (for
    # block divisibility) and K (required for correct accumulation).
    xc = x.astype(wT.dtype)
    if (Bp, Kp) != (B, K):
        xc = jnp.pad(xc, ((0, Bp - B), (0, Kp - K)))

    grid = (Bp // tm, Np // tn, Kp // tk)

    # Deeper pipelining on the streamed weight when the grid is deep enough to
    # benefit (hides HBM latency in small-batch / weight-bound cases).
    if grid[0] * grid[1] * grid[2] >= 3:
        wT_spec = pl.BlockSpec((tk, tn), lambda i, j, k: (k, j),
                               pipeline_mode=pl.Buffered(3))
    else:
        wT_spec = pl.BlockSpec((tk, tn), lambda i, j, k: (k, j))

    itemsize = jnp.dtype(wT.dtype).itemsize
    cost = pl.CostEstimate(
        flops=2 * Bp * Np * Kp,
        transcendentals=Bp * Np,
        bytes_accessed=(Bp * Kp * itemsize + Kp * Np * itemsize
                        + Np * 4 + Bp * Np * jnp.dtype(out_dtype).itemsize),
    )

    out_p = pl.pallas_call(
        _linear_sigmoid_kernel,
        out_shape=jax.ShapeDtypeStruct((Bp, Np), out_dtype),
        grid=grid,
        in_specs=[
            pl.BlockSpec((tm, tk), lambda i, j, k: (i, k)),   # x tile
            wT_spec,                                          # weight tile (K, N)
            pl.BlockSpec((1, tn), lambda i, j, k: (0, j)),    # bias tile
        ],
        out_specs=pl.BlockSpec((tm, tn), lambda i, j, k: (i, j)),
        scratch_shapes=[pltpu.VMEM((tm, tn), jnp.float32)],
        compiler_params=pltpu.CompilerParams(
            dimension_semantics=("parallel", "parallel", "arbitrary"),
            vmem_limit_bytes=32 * 1024 * 1024,   # safe on v5e/v6e/v7x; usage is ~MiB-scale
        ),
        cost_estimate=cost,
    )(xc, wT, b2d)

    return out_p[:B, :n_valid]


def add_sigmoid(x, params, *, tm_max=512):
    """Forward pass: sigmoid(x @ w.T + b) with pre-prepared params."""
    return _add_sigmoid_impl(
        x, params["wT"], params["b2d"],
        tm_max=tm_max, tn=params["tn"], tk=params["tk"], n_valid=params["N"],
    )


def reference(x, w, b):
    return jax.nn.sigmoid(x.astype(jnp.float32) @ w.T.astype(jnp.float32) + b)


if __name__ == "__main__":
    key = jax.random.PRNGKey(0)
    kx, kw, kb = jax.random.split(key, 3)

    # Small shapes consistent with the module's Linear stand-in.
    batch, in_features, out_features = 8, 32, 32
    x = jax.random.normal(kx, (batch, in_features), dtype=jnp.float32)
    w = jax.random.normal(kw, (out_features, in_features), dtype=jnp.float32) * 0.1
    b = jax.random.normal(kb, (out_features,), dtype=jnp.float32) * 0.1
    ref = reference(x, w, b)

    # f32 operand path (strict numerical check of kernel structure).
    params_f32 = prepare_linear(w, b, compute_dtype=jnp.float32)
    out_f32 = jax.block_until_ready(add_sigmoid(x, params_f32))
    assert out_f32.shape == (batch, out_features)
    assert jnp.allclose(out_f32, ref, atol=1e-5, rtol=1e-5), "f32 mismatch vs reference"

    # Default bf16 operand path (f32 accumulation), loose tolerance.
    params_bf16 = prepare_linear(w, b)
    out_bf16 = jax.block_until_ready(add_sigmoid(x, params_bf16))
    assert jnp.allclose(out_bf16, ref, atol=3e-2, rtol=3e-2), "bf16 mismatch"

    # Larger shapes exercising real M/N/K tiling (multi-step K reduction,
    # multiple parallel tiles, merged bias init path).
    kx2, kw2, kb2 = jax.random.split(jax.random.PRNGKey(1), 3)
    B2, K2, N2 = 256, 384, 512
    x2 = jax.random.normal(kx2, (B2, K2), dtype=jnp.float32)
    w2 = jax.random.normal(kw2, (N2, K2), dtype=jnp.float32) * 0.05
    b2 = jax.random.normal(kb2, (N2,), dtype=jnp.float32) * 0.05
    ref2 = reference(x2, w2, b2)

    params2_f32 = prepare_linear(w2, b2, compute_dtype=jnp.float32,
                                 tn_max=256, tk_max=128)
    out2 = jax.block_until_ready(add_sigmoid(x2, params2_f32, tm_max=128))
    assert jnp.allclose(out2, ref2, atol=1e-3, rtol=1e-3), "tiled f32 mismatch"

    params2_bf16 = prepare_linear(w2, b2)   # bf16 default, large tiles
    out2_bf16 = jax.block_until_ready(add_sigmoid(x2, params2_bf16))
    assert jnp.allclose(out2_bf16, ref2, atol=3e-2, rtol=3e-2), "tiled bf16 mismatch"

    print("KERNEL_OK")
</pallas_src>

<mosaic_0001>
module attributes {stable_mosaic.version = 11 : i64} {
  func.func @_linear_sigmoid_kernel(%arg0: i32, %arg1: i32, %arg2: i32, %arg3: memref<8x128xf32, #tpu.memory_space<vmem>>, %arg4: memref<128x128xf32, #tpu.memory_space<vmem>>, %arg5: memref<1x128xf32, #tpu.memory_space<vmem>>, %arg6: memref<8x128xf32, #tpu.memory_space<vmem>>, %arg7: memref<8x128xf32, #tpu.memory_space<vmem>>) attributes {dimension_semantics = [#tpu.dimension_semantics<parallel>, #tpu.dimension_semantics<parallel>, #tpu.dimension_semantics<arbitrary>], iteration_bounds = array<i64: 1, 1, 1>, scalar_prefetch = 0 : i64, scratch_operands = 1 : i64, tpu.core_type = #tpu.core_type<tc>, window_params = [{transform_indices = @transform_0, window_bounds = array<i64: 8, 128>}, {transform_indices = @transform_1, window_bounds = array<i64: 128, 128>}, {transform_indices = @transform_2, window_bounds = array<i64: 1, 128>}, {transform_indices = @transform_3, window_bounds = array<i64: 8, 128>}]} {
    %c0 = arith.constant 0 : index
    %c0_0 = arith.constant 0 : index
    %0 = vector.load %arg3[%c0, %c0_0] : memref<8x128xf32, #tpu.memory_space<vmem>>, vector<8x128xf32>
    %c0_1 = arith.constant 0 : index
    %c0_2 = arith.constant 0 : index
    %1 = vector.load %arg4[%c0_1, %c0_2] : memref<128x128xf32, #tpu.memory_space<vmem>>, vector<128x128xf32>
    %cst = arith.constant dense<0.000000e+00> : vector<8x128xf32>
    %2 = tpu.matmul %0, %1, %cst {dimension_numbers = #tpu.dot_dimension_numbers<[1], [0], [0], [1], [0, 0, 1, 1], [], []>} : vector<8x128xf32>, vector<128x128xf32>, vector<8x128xf32> -> vector<8x128xf32>
    %c0_i32 = arith.constant 0 : i32
    %3 = arith.cmpi eq, %arg2, %c0_i32 : i32
    %4 = arith.extui %3 : i1 to i32
    %c0_i32_3 = arith.constant 0 : i32
    %5 = arith.cmpi ne, %4, %c0_i32_3 : i32
    scf.if %5 {
      %c0_8 = arith.constant 0 : index
      %c0_9 = arith.constant 0 : index
      %12 = vector.load %arg5[%c0_8, %c0_9] : memref<1x128xf32, #tpu.memory_space<vmem>>, vector<1x128xf32>
      %13 = vector.broadcast %12 : vector<1x128xf32> to vector<8x128xf32>
      %14 = arith.addf %13, %2 : vector<8x128xf32>
      %c0_10 = arith.constant 0 : index
      %c0_11 = arith.constant 0 : index
      %15 = vector.load %arg7[%c0_10, %c0_11] : memref<8x128xf32, #tpu.memory_space<vmem>>, vector<8x128xf32>
      tpu.vector_store %arg7[%c0_10, %c0_11], %14 {strides = array<i32>} : memref<8x128xf32, #tpu.memory_space<vmem>>, vector<8x128xf32>,
    } else {
    }
    %c0_i32_4 = arith.constant 0 : i32
    %6 = arith.cmpi ne, %arg2, %c0_i32_4 : i32
    %7 = arith.extui %6 : i1 to i32
    %c0_i32_5 = arith.constant 0 : i32
    %8 = arith.cmpi ne, %7, %c0_i32_5 : i32
    scf.if %8 {
      %c0_8 = arith.constant 0 : index
      %c0_9 = arith.constant 0 : index
      %12 = vector.load %arg7[%c0_8, %c0_9] : memref<8x128xf32, #tpu.memory_space<vmem>>, vector<8x128xf32>
      %13 = arith.addf %12, %2 : vector<8x128xf32>
      %c0_10 = arith.constant 0 : index
      %c0_11 = arith.constant 0 : index
      %14 = vector.load %arg7[%c0_10, %c0_11] : memref<8x128xf32, #tpu.memory_space<vmem>>, vector<8x128xf32>
      tpu.vector_store %arg7[%c0_10, %c0_11], %13 {strides = array<i32>} : memref<8x128xf32, #tpu.memory_space<vmem>>, vector<8x128xf32>,
    } else {
    }
    %c0_i32_6 = arith.constant 0 : i32
    %9 = arith.cmpi eq, %arg2, %c0_i32_6 : i32
    %10 = arith.extui %9 : i1 to i32
    %c0_i32_7 = arith.constant 0 : i32
    %11 = arith.cmpi ne, %10, %c0_i32_7 : i32
    scf.if %11 {
      %c0_8 = arith.constant 0 : index
      %c0_9 = arith.constant 0 : index
      %12 = vector.load %arg7[%c0_8, %c0_9] : memref<8x128xf32, #tpu.memory_space<vmem>>, vector<8x128xf32>
      %cst_10 = arith.constant 5.000000e-01 : f32
      %13 = vector.broadcast %cst_10 : f32 to vector<8x128xf32>
      %14 = arith.mulf %13, %12 : vector<8x128xf32>
      %15 = math.tanh %14 : vector<8x128xf32>
      %cst_11 = arith.constant 1.000000e+00 : f32
      %16 = vector.broadcast %cst_11 : f32 to vector<8x128xf32>
      %17 = arith.addf %16, %15 : vector<8x128xf32>
      %cst_12 = arith.constant 5.000000e-01 : f32
      %18 = vector.broadcast %cst_12 : f32 to vector<8x128xf32>
      %19 = arith.mulf %18, %17 : vector<8x128xf32>
      %c0_13 = arith.constant 0 : index
      %c0_14 = arith.constant 0 : index
      %20 = vector.load %arg6[%c0_13, %c0_14] : memref<8x128xf32, #tpu.memory_space<vmem>>, vector<8x128xf32>
      tpu.vector_store %arg6[%c0_13, %c0_14], %19 {strides = array<i32>} : memref<8x128xf32, #tpu.memory_space<vmem>>, vector<8x128xf32>,
    } else {
    }
    return
  }
  func.func @transform_0(%arg0: i32, %arg1: i32, %arg2: i32) -> (i32, i32) {
    %c0_i32 = arith.constant 0 : i32
    return %arg0, %arg2 : i32, i32
  }
  func.func @transform_1(%arg0: i32, %arg1: i32, %arg2: i32) -> (i32, i32) {
    %c0_i32 = arith.constant 0 : i32
    return %arg2, %arg1 : i32, i32
  }
  func.func @transform_2(%arg0: i32, %arg1: i32, %arg2: i32) -> (i32, i32) {
    %c0_i32 = arith.constant 0 : i32
    %c0_i32_0 = arith.constant 0 : i32
    return %c0_i32, %arg1 : i32, i32
  }
  func.func @transform_3(%arg0: i32, %arg1: i32, %arg2: i32) -> (i32, i32) {
    %c0_i32 = arith.constant 0 : i32
    return %arg0, %arg1 : i32, i32
  }
}

</mosaic_0001>

<bundles_post_ra>
// kernel: _add_sigmoid_impl.1
= control target key start
LH: loop header
LB: loop body
LE: loop exit
PB: predicated region body
PF: predicated region fallthrough
CT: control target
= control target key end

     0   :  { %8 = vsyncpa [#allocation4], 0  ;;  %s206_s0 = inlined_call_operand.vmem [shape: f32[8,128], index: 0, kind: input, shape index: {}]   ;;  %s207_s1 = inlined_call_operand.hbm [shape: f32[128,128], index: 1, kind: input, shape index: {}]   ;;  %s208_s2 = inlined_call_operand.vmem [shape: f32[1,128], index: 2, kind: input, shape index: {}]   ;;  %s209_s3 = inlined_call_operand.hbm [shape: f32[8,128], index: 3, kind: output, shape index: {}]  }
   0x1   :  { %9 = vsyncpa [#allocation5], 0  ;;  %s16_s14 = sshll.u32 %s207_s1, 4  ;;  %s170_s15 = smov [#allocation3]   ;;  %s17_s14 = int_to_ptr.hbm [resolvable:$true] %s16_s14 }
   0x2   :  { %s18_s16 = sshll.u32 %s170_s15, 4  ;;  %s171_s17 = smov 128   ;;  %s19_s16 = int_to_ptr.vmem [resolvable:$true] %s18_s16 }
   0x3   :  { %s172_s18 = smov 8  }
   0x4   :  { %24 = dma.hbm_to_vmem [thread:$0]  %s17_s14, 2048, %s19_s16, [#allocation4], %s171_s17, %s171_s17, %s172_s18  }
   0x5   :  { %166 = dma.done.wait [#allocation4], 2048  }
   0x6   :  { %167 = vsyncadd [#allocation4], 4294965248  ;;  %v47_v0 = vld [vmem:[#allocation3 + $0x78] sm:$0xff]  ;;  %v46_v1 = vld [vmem:[#allocation3 + $0x70] sm:$0xff]  ;;  %s173_s22 = smov [#allocation6]   ;;  %s101_s26 = sshll.u32 %s209_s3, 4  ;;  %s102_s26 = int_to_ptr.hbm [resolvable:$true] %s101_s26 }
   0x7   :  { %48 = vmatpush.msra.mxu0 %v47_v0  ;;  %v45_v2 = vld [vmem:[#allocation3 + $0x68] sm:$0xff]  ;;  %v44_v3 = vld [vmem:[#allocation3 + $0x60] sm:$0xff]  ;;  %v43_v4 = vld [vmem:[#allocation3 + $0x58] sm:$0xff]  ;;  %s99_s23 = sshll.u32 %s173_s22, 4  ;;  %s100_s23 = int_to_ptr.vmem [resolvable:$true] %s99_s23 }
   0x8   :  { %v42_v5 = vld [vmem:[#allocation3 + $0x50] sm:$0xff]  ;;  %v41_v6 = vld [vmem:[#allocation3 + $0x48] sm:$0xff]  ;;  %v40_v7 = vld [vmem:[#allocation3 + $0x40] sm:$0xff] }
   0x9   :  { %49 = vmatpush.msra.mxu0 %v46_v1  ;;  %v39_v8 = vld [vmem:[#allocation3 + $0x38] sm:$0xff]  ;;  %v38_v9 = vld [vmem:[#allocation3 + $0x30] sm:$0xff]  ;;  %v37_v10 = vld [vmem:[#allocation3 + $0x28] sm:$0xff] }
   0xa   :  { %v36_v11 = vld [vmem:[#allocation3 + $0x20] sm:$0xff]  ;;  %v35_v12 = vld [vmem:[#allocation3 + $0x18] sm:$0xff]  ;;  %v34_v13 = vld [vmem:[#allocation3 + $0x10] sm:$0xff] }
   0xb   :  { %50 = vmatpush.msra.mxu0 %v45_v2  ;;  %v33_v14 = vld [vmem:[#allocation3 + $0x8] sm:$0xff]  ;;  %v32_v15 = vld [vmem:[#allocation3] sm:$0xff] }
   0xc   :  { %v31_v16 = vld [vmem:[%s206_s0] sm:$0xff] }
   0xd   :  { %51 = vmatpush.msra.mxu0 %v44_v3  ;;  %v115_v17 = vld [vmem:[%s208_s2] ss:$0 sm:$0xff] }
   0xf   :  { %52 = vmatpush.msra.mxu0 %v43_v4 }
  0x11   :  { %53 = vmatpush.msra.mxu0 %v42_v5 }
  0x13   :  { %54 = vmatpush.msra.mxu0 %v41_v6 }
  0x15   :  { %55 = vmatpush.msra.mxu0 %v40_v7 }
  0x17   :  { %56 = vmatpush.msra.mxu0 %v39_v8 }
  0x19   :  { %57 = vmatpush.msra.mxu0 %v38_v9 }
  0x1b   :  { %58 = vmatpush.msra.mxu0 %v37_v10 }
  0x1d   :  { %59 = vmatpush.msra.mxu0 %v36_v11 }
  0x1f   :  { %60 = vmatpush.msra.mxu0 %v35_v12 }
  0x21   :  { %61 = vmatpush.msra.mxu0 %v34_v13 }
  0x23   :  { %62 = vmatpush.msra.mxu0 %v33_v14 }
  0x25   :  { %63 = vmatpush.msra.mxu0 %v32_v15 }
  0x26   :  { %64 = vmatmul.f32.vlgmr.msra.gmra.mxu0 %v31_v16 }
  0xa3   :  { %v65_v18 = vpop.f32.mrf.mxu0 }
  0xa4   :  { %v76_v19 = vadd.f32 %v115_v17, %v65_v18 }
  0xa6   :  { %v89_v20 = vmul.f32 0.5, %v76_v19 }
  0xa8   :  { %116 = vtanh.f32 %v89_v20 }
  0xae   :  { %v117_v21 = vpop.eup %116 }
  0xaf   :  { %v91_v22 = vadd.f32 1.0, %v117_v21 }
  0xb1   :  { %v92_v23 = vmul.f32 0.5, %v91_v22 }
  0xb3   :  { %93 = vst [vmem:[#allocation6] sm:$0xff] %v92_v23 }
  0xb4   :  { %104 = dma.vmem_to_hbm [thread:$0]  %s100_s23, 128, %s102_s26, [#allocation5]  }
  0xb5   :  { %168 = dma.done.wait [#allocation5], 128  }
  0xb6   :  { %169 = vsyncadd [#allocation5], 4294967168 }
  0xb7   :  { %109 = vsyncpa [#allocation4], 1 }
  0xb8   :  { %110 = vsyncpa [#allocation5], 1 }

</bundles_post_ra>
